<compile_context>
chip_gen: v5e
topology: v5e:2x2
jax: 0.10.0
libtpu: 0.0.40
codegen_flags: <defaults>
</compile_context>

<pallas_src>
import jax
import jax.numpy as jnp
from jax.experimental import pallas as pl
from jax.experimental.pallas import tpu as pltpu

# ---------------- problem sizes ----------------------------------------------
OUT_DIM = 24                      # len(output)
TRV_DIM = 8                       # len(prev_trv) == Gaussian outsize
D_IN = OUT_DIM + TRV_DIM          # 32, concat length fed to module_list[t]
HIDDEN = 32
D_OUT = 2 * TRV_DIM               # mean + logcov
HORIZON = 4

LANE = 128                        # padded lane width (vreg lane dim)
TRV_OFF = OUT_DIM                 # lanes [24, 32) hold prev_trv inside x
BIAS_LANE = LANE - 1              # lane 127 carries the constant 1.0

B = 128                           # batch of independent trajectories
B_TILE = 64                       # M tile -> batch grid extent 2 (megacore)


# ---------------- Pallas kernel ----------------------------------------------
def _qnet_tv_rollout_kernel(obs_ref,      # (1, B_TILE, LANE)  output_t (+ bias 1 @ lane 127)
                            trv0_ref,     # (B_TILE, LANE)     initial prev_trv (lanes 24..31)
                            samp_ref,     # (1, B_TILE, LANE)  N(0,I) sample (lanes 24..31)
                            params_ref,   # (1, 3, LANE, LANE) [W1_aug, W2m_aug, W2l_aug]
                            ret_ref,      # (1, B_TILE, LANE)  ret_t (lanes 24..31)
                            trv_carry):   # VMEM (B_TILE, LANE) prev_trv carry
    t = pl.program_id(1)

    @pl.when(t == 0)
    def _():
        trv_carry[...] = trv0_ref[...]

    # x = concat([output_t, prev_trv]) in lanes [0, 32); lane 127 == 1.0 (bias)
    x = obs_ref[0, :, :] + trv_carry[...]

    w1 = params_ref[0, 0, :, :]
    w2m = params_ref[0, 1, :, :]
    w2l = params_ref[0, 2, :, :]

    h = jnp.maximum(jnp.dot(x, w1, preferred_element_type=jnp.float32), 0.0)
    mean = jnp.dot(h, w2m, preferred_element_type=jnp.float32)
    logcov = jnp.dot(h, w2l, preferred_element_type=jnp.float32)
    scale = jnp.sqrt(jnp.exp(logcov) + 0.001)
    ret = mean + scale * samp_ref[0, :, :]       # zero outside lanes 24..31

    ret_ref[0, :, :] = ret                       # lane-dense (128) store
    trv_carry[...] = ret                         # becomes prev_trv_{t+1}


# ---------------- host wrapper ------------------------------------------------
@jax.jit
def qnet_tv_rollout(obs, trv0, samples, params_slab):
    """Runs QNetTV.forward for t = 0..HORIZON-1, chaining ret -> prev_trv.

    obs:      (HORIZON, B, OUT_DIM)   per-step `output`
    trv0:     (B, TRV_DIM)            initial prev_trv
    samples:  (HORIZON, B, TRV_DIM)   standard-normal draws (explicit `sample`)
    params_slab: (HORIZON, 3, LANE, LANE) packed per-step weights (pack_params)
    Returns (rets (HORIZON, B, TRV_DIM), samples) mirroring forward's return.
    """
    H, Bv, _ = obs.shape

    obs_pad = jnp.zeros((H, Bv, LANE), jnp.float32)
    obs_pad = obs_pad.at[..., :OUT_DIM].set(obs)
    obs_pad = obs_pad.at[..., BIAS_LANE].set(1.0)

    trv0_pad = jnp.zeros((Bv, LANE), jnp.float32)
    trv0_pad = trv0_pad.at[:, TRV_OFF:TRV_OFF + TRV_DIM].set(trv0)

    samp_pad = jnp.zeros((H, Bv, LANE), jnp.float32)
    samp_pad = samp_pad.at[..., TRV_OFF:TRV_OFF + TRV_DIM].set(samples)

    grid_spec = pltpu.PrefetchScalarGridSpec(
        num_scalar_prefetch=0,
        grid=(Bv // B_TILE, H),                       # (batch tiles, horizon)
        in_specs=[
            pl.BlockSpec((1, B_TILE, LANE), lambda b, t: (t, b, 0)),
            pl.BlockSpec((B_TILE, LANE), lambda b, t: (b, 0)),
            pl.BlockSpec((1, B_TILE, LANE), lambda b, t: (t, b, 0)),
            pl.BlockSpec((1, 3, LANE, LANE), lambda b, t: (t, 0, 0, 0)),
        ],
        out_specs=pl.BlockSpec((1, B_TILE, LANE), lambda b, t: (t, b, 0)),
        scratch_shapes=[pltpu.VMEM((B_TILE, LANE), jnp.float32)],
    )

    rets_pad = pl.pallas_call(
        _qnet_tv_rollout_kernel,
        out_shape=jax.ShapeDtypeStruct((H, Bv, LANE), jnp.float32),
        grid_spec=grid_spec,
        compiler_params=pltpu.CompilerParams(
            dimension_semantics=("parallel", "arbitrary")),
    )(obs_pad, trv0_pad, samp_pad, params_slab)

    rets = rets_pad[..., TRV_OFF:TRV_OFF + TRV_DIM]
    return rets, samples


# ---------------- parameter packing ------------------------------------------
def pack_params(raw_params):
    """Pack (w1, b1, w2, b2) into one lane-dense slab per timestep.

    Layout per step (all (LANE, LANE)):
      slab[0] = W1_aug : rows 0..31 = W1 (in,out), row 127 = [b1 | ... | 1.0]
      slab[1] = W2m_aug: rows 0..31 = W2[:, :8] into lanes 24..31, row 127 = b2[:8]
      slab[2] = W2l_aug: rows 0..31 = W2[:, 8:] into lanes 24..31, row 127 = b2[8:]
    """
    w1, b1, w2, b2 = raw_params

    w1_aug = jnp.zeros((HORIZON, LANE, LANE), jnp.float32)
    w1_aug = w1_aug.at[:, :D_IN, :HIDDEN].set(w1)
    w1_aug = w1_aug.at[:, BIAS_LANE, :HIDDEN].set(b1)
    w1_aug = w1_aug.at[:, BIAS_LANE, BIAS_LANE].set(1.0)   # pass bias lane through

    w2m_aug = jnp.zeros((HORIZON, LANE, LANE), jnp.float32)
    w2m_aug = w2m_aug.at[:, :HIDDEN, TRV_OFF:TRV_OFF + TRV_DIM].set(w2[:, :, :TRV_DIM])
    w2m_aug = w2m_aug.at[:, BIAS_LANE, TRV_OFF:TRV_OFF + TRV_DIM].set(b2[:, :TRV_DIM])

    w2l_aug = jnp.zeros((HORIZON, LANE, LANE), jnp.float32)
    w2l_aug = w2l_aug.at[:, :HIDDEN, TRV_OFF:TRV_OFF + TRV_DIM].set(w2[:, :, TRV_DIM:])
    w2l_aug = w2l_aug.at[:, BIAS_LANE, TRV_OFF:TRV_OFF + TRV_DIM].set(b2[:, TRV_DIM:])

    return jnp.stack([w1_aug, w2m_aug, w2l_aug], axis=1)   # (HORIZON, 3, LANE, LANE)


# ---------------- deterministic parameter init --------------------------------
def init_params(key):
    k1, k2, k3, k4 = jax.random.split(key, 4)
    s1 = 1.0 / jnp.sqrt(D_IN)
    s2 = 1.0 / jnp.sqrt(HIDDEN)
    w1 = jax.random.uniform(k1, (HORIZON, D_IN, HIDDEN), jnp.float32, -s1, s1)
    b1 = jax.random.uniform(k2, (HORIZON, HIDDEN), jnp.float32, -s1, s1)
    w2 = jax.random.uniform(k3, (HORIZON, HIDDEN, D_OUT), jnp.float32, -s2, s2)
    b2 = jax.random.uniform(k4, (HORIZON, D_OUT), jnp.float32, -s2, s2)
    return w1, b1, w2, b2


# ---------------- pure-JAX reference (per-step QNetTV.forward, chained) -------
def reference_rollout(obs, trv0, samples, raw_params):
    w1, b1, w2, b2 = raw_params
    trv = trv0
    rets = []
    for t in range(HORIZON):
        x = jnp.concatenate([obs[t], trv], axis=-1)            # (B, D_IN)
        h = jnp.maximum(x @ w1[t] + b1[t], 0.0)
        out = h @ w2[t] + b2[t]
        mean, logcov = out[:, :TRV_DIM], out[:, TRV_DIM:]
        ret = mean + jnp.sqrt(jnp.exp(logcov) + 0.001) * samples[t]
        rets.append(ret)
        trv = ret
    return jnp.stack(rets, axis=0)                             # (HORIZON, B, TRV)


if __name__ == "__main__":
    key = jax.random.PRNGKey(0)
    kp, ko, kt, ks = jax.random.split(key, 4)

    raw_params = init_params(kp)
    obs = jax.random.normal(ko, (HORIZON, B, OUT_DIM), jnp.float32)
    trv0 = jax.random.normal(kt, (B, TRV_DIM), jnp.float32)
    # Deterministic stand-in for MultivariateNormal(0, I).sample() per step.
    samples = jax.random.normal(ks, (HORIZON, B, TRV_DIM), jnp.float32)

    slab = pack_params(raw_params)

    rets, samp_out = qnet_tv_rollout(obs, trv0, samples, slab)
    jax.block_until_ready(rets)

    ref = reference_rollout(obs, trv0, samples, raw_params)
    assert rets.shape == (HORIZON, B, TRV_DIM)
    assert samp_out.shape == (HORIZON, B, TRV_DIM)
    err = float(jnp.max(jnp.abs(rets - ref)))
    assert jnp.allclose(rets, ref, atol=1e-4, rtol=1e-4), err

    print("KERNEL_OK")
</pallas_src>

<mosaic_0001>
module attributes {stable_mosaic.version = 11 : i64} {
  func.func @_qnet_tv_rollout_kernel(%arg0: i32, %arg1: i32, %arg2: memref<1x64x128xf32, #tpu.memory_space<vmem>>, %arg3: memref<64x128xf32, #tpu.memory_space<vmem>>, %arg4: memref<1x64x128xf32, #tpu.memory_space<vmem>>, %arg5: memref<1x3x128x128xf32, #tpu.memory_space<vmem>>, %arg6: memref<1x64x128xf32, #tpu.memory_space<vmem>>, %arg7: memref<64x128xf32, #tpu.memory_space<vmem>>) attributes {dimension_semantics = [#tpu.dimension_semantics<parallel>, #tpu.dimension_semantics<arbitrary>], iteration_bounds = array<i64: 2, 4>, scalar_prefetch = 0 : i64, scratch_operands = 1 : i64, tpu.core_type = #tpu.core_type<tc>, window_params = [{transform_indices = @transform_0, window_bounds = array<i64: 1, 64, 128>}, {transform_indices = @transform_1, window_bounds = array<i64: 64, 128>}, {transform_indices = @transform_2, window_bounds = array<i64: 1, 64, 128>}, {transform_indices = @transform_3, window_bounds = array<i64: 1, 3, 128, 128>}, {transform_indices = @transform_4, window_bounds = array<i64: 1, 64, 128>}]} {
    %c0_i32 = arith.constant 0 : i32
    %0 = arith.cmpi eq, %arg1, %c0_i32 : i32
    %1 = arith.extui %0 : i1 to i32
    %c0_i32_0 = arith.constant 0 : i32
    %2 = arith.cmpi ne, %1, %c0_i32_0 : i32
    scf.if %2 {
      %c0_27 = arith.constant 0 : index
      %c0_28 = arith.constant 0 : index
      %30 = vector.load %arg3[%c0_27, %c0_28] : memref<64x128xf32, #tpu.memory_space<vmem>>, vector<64x128xf32>
      %c0_29 = arith.constant 0 : index
      %c0_30 = arith.constant 0 : index
      %31 = vector.load %arg7[%c0_29, %c0_30] : memref<64x128xf32, #tpu.memory_space<vmem>>, vector<64x128xf32>
      tpu.vector_store %arg7[%c0_29, %c0_30], %30 {strides = array<i32>} : memref<64x128xf32, #tpu.memory_space<vmem>>, vector<64x128xf32>,
    } else {
    }
    %c0 = arith.constant 0 : index
    %c0_1 = arith.constant 0 : index
    %c0_2 = arith.constant 0 : index
    %3 = vector.load %arg2[%c0, %c0_1, %c0_2] : memref<1x64x128xf32, #tpu.memory_space<vmem>>, vector<1x64x128xf32>
    %4 = vector.shape_cast %3 : vector<1x64x128xf32> to vector<64x128xf32>
    %c0_3 = arith.constant 0 : index
    %c0_4 = arith.constant 0 : index
    %5 = vector.load %arg7[%c0_3, %c0_4] : memref<64x128xf32, #tpu.memory_space<vmem>>, vector<64x128xf32>
    %6 = arith.addf %4, %5 : vector<64x128xf32>
    %c0_5 = arith.constant 0 : index
    %c0_6 = arith.constant 0 : index
    %c0_7 = arith.constant 0 : index
    %c0_8 = arith.constant 0 : index
    %7 = vector.load %arg5[%c0_5, %c0_6, %c0_7, %c0_8] : memref<1x3x128x128xf32, #tpu.memory_space<vmem>>, vector<1x1x128x128xf32>
    %8 = vector.shape_cast %7 : vector<1x1x128x128xf32> to vector<128x128xf32>
    %c0_9 = arith.constant 0 : index
    %c1 = arith.constant 1 : index
    %c0_10 = arith.constant 0 : index
    %c0_11 = arith.constant 0 : index
    %9 = vector.load %arg5[%c0_9, %c1, %c0_10, %c0_11] : memref<1x3x128x128xf32, #tpu.memory_space<vmem>>, vector<1x1x128x128xf32>
    %10 = vector.shape_cast %9 : vector<1x1x128x128xf32> to vector<128x128xf32>
    %c0_12 = arith.constant 0 : index
    %c2 = arith.constant 2 : index
    %c0_13 = arith.constant 0 : index
    %c0_14 = arith.constant 0 : index
    %11 = vector.load %arg5[%c0_12, %c2, %c0_13, %c0_14] : memref<1x3x128x128xf32, #tpu.memory_space<vmem>>, vector<1x1x128x128xf32>
    %12 = vector.shape_cast %11 : vector<1x1x128x128xf32> to vector<128x128xf32>
    %cst = arith.constant dense<0.000000e+00> : vector<64x128xf32>
    %13 = tpu.matmul %6, %8, %cst {dimension_numbers = #tpu.dot_dimension_numbers<[1], [0], [0], [1], [0, 0, 1, 1], [], []>} : vector<64x128xf32>, vector<128x128xf32>, vector<64x128xf32> -> vector<64x128xf32>
    %cst_15 = arith.constant 0.000000e+00 : f32
    %14 = vector.broadcast %cst_15 : f32 to vector<64x128xf32>
    %15 = arith.maximumf %13, %14 : vector<64x128xf32>
    %cst_16 = arith.constant dense<0.000000e+00> : vector<64x128xf32>
    %16 = tpu.matmul %15, %10, %cst_16 {dimension_numbers = #tpu.dot_dimension_numbers<[1], [0], [0], [1], [0, 0, 1, 1], [], []>} : vector<64x128xf32>, vector<128x128xf32>, vector<64x128xf32> -> vector<64x128xf32>
    %cst_17 = arith.constant dense<0.000000e+00> : vector<64x128xf32>
    %17 = tpu.matmul %15, %12, %cst_17 {dimension_numbers = #tpu.dot_dimension_numbers<[1], [0], [0], [1], [0, 0, 1, 1], [], []>} : vector<64x128xf32>, vector<128x128xf32>, vector<64x128xf32> -> vector<64x128xf32>
    %18 = math.exp %17 : vector<64x128xf32>
    %cst_18 = arith.constant 1.000000e-03 : f32
    %19 = vector.broadcast %cst_18 : f32 to vector<64x128xf32>
    %20 = arith.addf %18, %19 : vector<64x128xf32>
    %21 = math.sqrt %20 : vector<64x128xf32>
    %c0_19 = arith.constant 0 : index
    %c0_20 = arith.constant 0 : index
    %c0_21 = arith.constant 0 : index
    %22 = vector.load %arg4[%c0_19, %c0_20, %c0_21] : memref<1x64x128xf32, #tpu.memory_space<vmem>>, vector<1x64x128xf32>
    %23 = vector.shape_cast %22 : vector<1x64x128xf32> to vector<64x128xf32>
    %24 = arith.mulf %21, %23 : vector<64x128xf32>
    %25 = arith.addf %16, %24 : vector<64x128xf32>
    %c0_22 = arith.constant 0 : index
    %c0_23 = arith.constant 0 : index
    %c0_24 = arith.constant 0 : index
    %26 = vector.load %arg6[%c0_22, %c0_23, %c0_24] : memref<1x64x128xf32, #tpu.memory_space<vmem>>, vector<1x64x128xf32>
    %27 = vector.shape_cast %26 : vector<1x64x128xf32> to vector<64x128xf32>
    %28 = vector.shape_cast %25 : vector<64x128xf32> to vector<1x64x128xf32>
    tpu.vector_store %arg6[%c0_22, %c0_23, %c0_24], %28 {strides = array<i32>} : memref<1x64x128xf32, #tpu.memory_space<vmem>>, vector<1x64x128xf32>,
    %c0_25 = arith.constant 0 : index
    %c0_26 = arith.constant 0 : index
    %29 = vector.load %arg7[%c0_25, %c0_26] : memref<64x128xf32, #tpu.memory_space<vmem>>, vector<64x128xf32>
    tpu.vector_store %arg7[%c0_25, %c0_26], %25 {strides = array<i32>} : memref<64x128xf32, #tpu.memory_space<vmem>>, vector<64x128xf32>,
    return
  }
  func.func @transform_0(%arg0: i32, %arg1: i32) -> (i32, i32, i32) {
    %c0_i32 = arith.constant 0 : i32
    %c0_i32_0 = arith.constant 0 : i32
    return %arg1, %arg0, %c0_i32 : i32, i32, i32
  }
  func.func @transform_1(%arg0: i32, %arg1: i32) -> (i32, i32) {
    %c0_i32 = arith.constant 0 : i32
    %c0_i32_0 = arith.constant 0 : i32
    return %arg0, %c0_i32 : i32, i32
  }
  func.func @transform_2(%arg0: i32, %arg1: i32) -> (i32, i32, i32) {
    %c0_i32 = arith.constant 0 : i32
    %c0_i32_0 = arith.constant 0 : i32
    return %arg1, %arg0, %c0_i32 : i32, i32, i32
  }
  func.func @transform_3(%arg0: i32, %arg1: i32) -> (i32, i32, i32, i32) {
    %c0_i32 = arith.constant 0 : i32
    %c0_i32_0 = arith.constant 0 : i32
    %c0_i32_1 = arith.constant 0 : i32
    %c0_i32_2 = arith.constant 0 : i32
    return %arg1, %c0_i32, %c0_i32_0, %c0_i32_1 : i32, i32, i32, i32
  }
  func.func @transform_4(%arg0: i32, %arg1: i32) -> (i32, i32, i32) {
    %c0_i32 = arith.constant 0 : i32
    %c0_i32_0 = arith.constant 0 : i32
    return %arg1, %arg0, %c0_i32 : i32, i32, i32
  }
}

</mosaic_0001>

<bundles_post_ra>
// kernel: qnet_tv_rollout.1
= control target key start
LH: loop header
LB: loop body
LE: loop exit
PB: predicated region body
PF: predicated region fallthrough
CT: control target
= control target key end

     0   :  { %s1046_s15 = smov 0   ;;  %s1048_s16 = smov 0   ;;  %s1254_s0 = inlined_call_operand.vmem [shape: f32[4,128,128], index: 0, kind: input, shape index: {}]   ;;  %s1255_s1 = inlined_call_operand.vmem [shape: f32[128,128], index: 1, kind: input, shape index: {}]   ;;  %s1256_s2 = inlined_call_operand.vmem [shape: f32[4,128,128], index: 2, kind: input, shape index: {}]   ;;  %s1257_s3 = inlined_call_operand.vmem [shape: f32[4,3,128,128], index: 3, kind: input, shape index: {}]   ;;  %s1258_s4 = inlined_call_operand.vmem [shape: f32[4,128,128], index: 4, kind: output, shape index: {}]  }
   0x1   :  { %s1050_s17 = smov 0   ;;  %s1052_s18 = smov 0  }
   0x2   :  { %s1054_s19 = smov 0  }
   0x3 LB: > { %s23_s20 = sadd.s32 1, %s1011_s17  ;;  %s26_s21 = sadd.s32 1, %s1015_s18  ;;  %s1019_s19 = sphi %s1054_s19, %s14_s19   ;;  %s1015_s18 = sphi %s1052_s18, %s1262_s18   ;;  %s1011_s17 = sphi %s1050_s17, %s1261_s17   ;;  %s1007_s16 = sphi %s1048_s16, %s1260_s16   ;;  %s1003_s15 = sphi %s1046_s15, %s1259_s15  }
   0x4   : > { %p24_p0 = scmp.ge.s32.totalorder %s23_s20, 4  ;;  %p828_p1 = scmp.ge.s32.totalorder %s1019_s19, 1 }
   0x5   : > { %p221_p2 = scmp.lt.s32.totalorder %s1019_s19, 9 }
   0x6   : > { %s1264_s20 = smov (%p24_p0, %s23_s20), 0  ;;  %s1266_s21 = smov (!%p24_p0, %s26_s21), %s1015_s18 }
   0x7   : > { %p222_p3 = pnand %p828_p1, %p221_p2  ;;  %p28_p4 = scmp.ge.s32.totalorder %s1266_s21, 2 }
   0x8   : > { %s829_s22 = sshll.u32 (!%p222_p3), %s1007_s16, 3  ;;  %p275_p5 = scmp.lt.s32.totalorder (!%p222_p3), %s1003_s15, 3 }
   0x9   : > { %s1268_s21 = smov (%p28_p4, %s1266_s21), 0  ;;  %225 = sbr.rel (%p222_p3) target bundleno = 407 (0x197), region = 36 }
   0xa   : > { %p277_p6 = scmp.lt.s32.totalorder (!%p222_p3), %s829_s22, 15  ;;  %p841_p7 = scmp.ne.s32.totalorder (!%p222_p3), %s1003_s15, 0 }
   0xe   : > { %s276_s23 = scalar_select %p275_p5, %s1003_s15, 3 }
   0xf   : > { %s1270_s22 = smov (!%p277_p6, %s829_s22), 15 }
  0x10   : > { %s830_s24 = sshll.u32 %s276_s23, 4  ;;  %s908_s25 = smul.u32 384, %s276_s23 }
  0x11   : > { %s280_s26 = sadd.s32 %s830_s24, %s1270_s22  ;;  %s833_s27 = sshll.u32 %s1270_s22, 3 }
  0x12   : > { %s831_s28 = sshll.u32 %s280_s26, 3  ;;  %s288_s5 = scalar_lea.vmem %s1255_s1, %s833_s27 }
  0x13   : > { %s1086_s8 = scalar_lea.vmem %s1254_s0, %s831_s28  ;;  %s1091_s11 = scalar_lea.vmem %s1256_s2, %s831_s28 }
  0x14   : > { %s1096_s14 = scalar_lea.vmem %s1257_s3, %s908_s25  ;;  %s1101_s23 = scalar_lea.vmem %s1258_s4, %s831_s28 }
  0x15   : > { %318 = sbr.rel (%p841_p7) target bundleno = 35 (0x23), region = 40 }
  0x1a   : > { %v319_v0 = vld [vmem:[%s288_s5] sm:$0xff]  ;;  %v320_v1 = vld [vmem:[%s288_s5 + $0x8] sm:$0xff]  ;;  %v321_v2 = vld [vmem:[%s288_s5 + $0x10] sm:$0xff] }
  0x1b   : > { %327 = vst [vmem:[#allocation2 + $0x30] sm:$0xff] %v319_v0  ;;  %v322_v3 = vld [vmem:[%s288_s5 + $0x18] sm:$0xff]  ;;  %v323_v4 = vld [vmem:[%s288_s5 + $0x20] sm:$0xff]  ;;  %v324_v5 = vld [vmem:[%s288_s5 + $0x28] sm:$0xff] }
  0x1c   : > { %328 = vst [vmem:[#allocation2] sm:$0xff] %v320_v1  ;;  %v325_v6 = vld [vmem:[%s288_s5 + $0x30] sm:$0xff]  ;;  %v326_v7 = vld [vmem:[%s288_s5 + $0x38] sm:$0xff] }
  0x1d   : > { %329 = vst [vmem:[#allocation2 + $0x18] sm:$0xff] %v321_v2 }
  0x1e   : > { %330 = vst [vmem:[#allocation2 + $0x10] sm:$0xff] %v322_v3 }
  0x1f   : > { %331 = vst [vmem:[#allocation2 + $0x8] sm:$0xff] %v323_v4 }
  0x20   : > { %332 = vst [vmem:[#allocation2 + $0x20] sm:$0xff] %v324_v5 }
  0x21   : > { %333 = vst [vmem:[#allocation2 + $0x28] sm:$0xff] %v325_v6 }
  0x22   : > { %334 = vst [vmem:[#allocation2 + $0x38] sm:$0xff] %v326_v7 }
  0x23 PF: > { %v374_v8 = vld [vmem:[%s1096_s14 + $0x78] sm:$0xff]  ;;  %v373_v9 = vld [vmem:[%s1096_s14 + $0x70] sm:$0xff]  ;;  %v372_v10 = vld [vmem:[%s1096_s14 + $0x68] sm:$0xff] }
  0x24   : > { %409 = vmatpush.msra.mxu0 %v374_v8  ;;  %876 = vmatpush.msra.mxu3 %v374_v8  ;;  %v371_v11 = vld [vmem:[%s1096_s14 + $0x60] sm:$0xff]  ;;  %v370_v12 = vld [vmem:[%s1096_s14 + $0x58] sm:$0xff]  ;;  %v369_v13 = vld [vmem:[%s1096_s14 + $0x50] sm:$0xff] }
  0x25   : > { %v368_v14 = vld [vmem:[%s1096_s14 + $0x48] sm:$0xff]  ;;  %v367_v15 = vld [vmem:[%s1096_s14 + $0x40] sm:$0xff]  ;;  %v366_v16 = vld [vmem:[%s1096_s14 + $0x38] sm:$0xff] }
  0x26   : > { %410 = vmatpush.msra.mxu0 %v373_v9  ;;  %877 = vmatpush.msra.mxu3 %v373_v9  ;;  %v365_v17 = vld [vmem:[%s1096_s14 + $0x30] sm:$0xff]  ;;  %v364_v18 = vld [vmem:[%s1096_s14 + $0x28] sm:$0xff]  ;;  %v363_v19 = vld [vmem:[%s1096_s14 + $0x20] sm:$0xff] }
  0x27   : > { %v362_v20 = vld [vmem:[%s1096_s14 + $0x18] sm:$0xff]  ;;  %v361_v21 = vld [vmem:[%s1096_s14 + $0x10] sm:$0xff]  ;;  %v335_v22 = vld [vmem:[%s1086_s8] sm:$0xff] }
  0x28   : > { %411 = vmatpush.msra.mxu0 %v372_v10  ;;  %878 = vmatpush.msra.mxu3 %v372_v10  ;;  %v343_v23 = vld [vmem:[#allocation2 + $0x30] sm:$0xff]  ;;  %v349_v25 = vld [vmem:[#allocation2 + $0x28] sm:$0xff]  ;;  %v359_v27 = vld [vmem:[%s1096_s14] sm:$0xff] }
  0x29   : > { %v341_v24 = vld [vmem:[%s1086_s8 + $0x30] sm:$0xff]  ;;  %v360_v26 = vld [vmem:[%s1096_s14 + $0x8] sm:$0xff]  ;;  %v351_v28 = vadd.f32 %v343_v23, %v335_v22  ;;  %v344_v31 = vld [vmem:[#allocation2] sm:$0xff] }
  0x2a   : > { %412 = vmatpush.msra.mxu0 %v371_v11  ;;  %879 = vmatpush.msra.mxu3 %v371_v11  ;;  %v357_v29 = vadd.f32 %v349_v25, %v341_v24  ;;  %v336_v30 = vld [vmem:[%s1086_s8 + $0x8] sm:$0xff]  ;;  %v342_v32 = vld [vmem:[%s1086_s8 + $0x38] sm:$0xff]  ;;  %v872_v38 = vld [vmem:[%s1096_s14 + $0x170] sm:$0xff] }
  0x2b   : > { %v350_v33 = vld [vmem:[#allocation2 + $0x38] sm:$0xff]  ;;  %v352_v34 = vadd.f32 %v344_v31, %v336_v30  ;;  %v337_v39 = vld [vmem:[%s1086_s8 + $0x10] sm:$0xff]  ;;  %v871_v42 = vld [vmem:[%s1096_s14 + $0x168] sm:$0xff] }
  0x2c   : > { %413 = vmatpush.msra.mxu0 %v370_v12  ;;  %880 = vmatpush.msra.mxu3 %v370_v12  ;;  %v358_v35 = vadd.f32 %v350_v33, %v342_v32  ;;  %v873_v36 = vld [vmem:[%s1096_s14 + $0x178] sm:$0xff]  ;;  %v856_v41 = vld [vmem:[%s1096_s14 + $0xf0] sm:$0xff]  ;;  %v855_v43 = vld [vmem:[%s1096_s14 + $0xe8] sm:$0xff] }
  0x2d   : > { %v857_v37 = vld [vmem:[%s1096_s14 + $0xf8] sm:$0xff]  ;;  %458 = vmatpush.msra.mxu1 %v873_v36  ;;  %v870_v45 = vld [vmem:[%s1096_s14 + $0x160] sm:$0xff]  ;;  %v868_v49 = vld [vmem:[%s1096_s14 + $0x150] sm:$0xff] }
  0x2e   : > { %414 = vmatpush.msra.mxu0 %v369_v13  ;;  %881 = vmatpush.msra.mxu3 %v369_v13  ;;  %v345_v40 = vld [vmem:[#allocation2 + $0x18] sm:$0xff]  ;;  %v854_v46 = vld [vmem:[%s1096_s14 + $0xe0] sm:$0xff]  ;;  %v852_v50 = vld [vmem:[%s1096_s14 + $0xd0] sm:$0xff] }
  0x2f   : > { %635 = vmatpush.msra.mxu2 %v857_v37  ;;  %459 = vmatpush.msra.mxu1 %v872_v38  ;;  %v353_v44 = vadd.f32 %v345_v40, %v337_v39  ;;  %v869_v47 = vld [vmem:[%s1096_s14 + $0x158] sm:$0xff]  ;;  %v346_v52 = vld [vmem:[#allocation2 + $0x10] sm:$0xff]  ;;  %v867_v53 = vld [vmem:[%s1096_s14 + $0x148] sm:$0xff] }
  0x30   : > { %415 = vmatpush.msra.mxu0 %v368_v14  ;;  %882 = vmatpush.msra.mxu3 %v368_v14  ;;  %v853_v48 = vld [vmem:[%s1096_s14 + $0xd8] sm:$0xff]  ;;  %v851_v54 = vld [vmem:[%s1096_s14 + $0xc8] sm:$0xff]  ;;  %v866_v56 = vld [vmem:[%s1096_s14 + $0x140] sm:$0xff] }
  0x31   : > { %636 = vmatpush.msra.mxu2 %v856_v41  ;;  %460 = vmatpush.msra.mxu1 %v871_v42  ;;  %v338_v51 = vld [vmem:[%s1086_s8 + $0x18] sm:$0xff]  ;;  %v850_v57 = vld [vmem:[%s1096_s14 + $0xc0] sm:$0xff]  ;;  %v864_v60 = vld [vmem:[%s1096_s14 + $0x130] sm:$0xff] }
  0x32   : > { %416 = vmatpush.msra.mxu0 %v367_v15  ;;  %883 = vmatpush.msra.mxu3 %v367_v15  ;;  %v354_v55 = vadd.f32 %v346_v52, %v338_v51  ;;  %v865_v58 = vld [vmem:[%s1096_s14 + $0x138] sm:$0xff]  ;;  %v848_v61 = vld [vmem:[%s1096_s14 + $0xb0] sm:$0xff]  ;;  %v339_v62 = vld [vmem:[%s1086_s8 + $0x20] sm:$0xff] }
  0x33   : > { %637 = vmatpush.msra.mxu2 %v855_v43  ;;  %461 = vmatpush.msra.mxu1 %v870_v45  ;;  %v849_v59 = vld [vmem:[%s1096_s14 + $0xb8] sm:$0xff]  ;;  %v347_v63 = vld [vmem:[#allocation2 + $0x8] sm:$0xff]  ;;  %v862_v3 = vld [vmem:[%s1096_s14 + $0x120] sm:$0xff] }
  0x34   : > { %417 = vmatpush.msra.mxu0 %v366_v16  ;;  %884 = vmatpush.msra.mxu3 %v366_v16  ;;  %v863_v0 = vld [vmem:[%s1096_s14 + $0x128] sm:$0xff]  ;;  %v355_v2 = vadd.f32 %v347_v63, %v339_v62  ;;  %v846_v4 = vld [vmem:[%s1096_s14 + $0xa0] sm:$0xff]  ;;  %v861_v5 = vld [vmem:[%s1096_s14 + $0x118] sm:$0xff] }
  0x35   : > { %638 = vmatpush.msra.mxu2 %v854_v46  ;;  %462 = vmatpush.msra.mxu1 %v869_v47  ;;  %v847_v1 = vld [vmem:[%s1096_s14 + $0xa8] sm:$0xff]  ;;  %v845_v6 = vld [vmem:[%s1096_s14 + $0x98] sm:$0xff]  ;;  %v860_v7 = vld [vmem:[%s1096_s14 + $0x110] sm:$0xff] }
  0x36   : > { %418 = vmatpush.msra.mxu0 %v365_v17  ;;  %885 = vmatpush.msra.mxu3 %v365_v17  ;;  %v844_v8 = vld [vmem:[%s1096_s14 + $0x90] sm:$0xff]  ;;  %v340_v9 = vld [vmem:[%s1086_s8 + $0x28] sm:$0xff]  ;;  %v348_v10 = vld [vmem:[#allocation2 + $0x20] sm:$0xff] }
  0x37   : > { %639 = vmatpush.msra.mxu2 %v853_v48  ;;  %463 = vmatpush.msra.mxu1 %v868_v49  ;;  %v356_v11 = vadd.f32 %v348_v10, %v340_v9  ;;  %v859_v12 = vld [vmem:[%s1096_s14 + $0x108] sm:$0xff]  ;;  %v858_v14 = vld [vmem:[%s1096_s14 + $0x100] sm:$0xff] }
  0x38   : > { %419 = vmatpush.msra.mxu0 %v364_v18  ;;  %886 = vmatpush.msra.mxu3 %v364_v18  ;;  %v843_v13 = vld [vmem:[%s1096_s14 + $0x88] sm:$0xff]  ;;  %v842_v15 = vld [vmem:[%s1096_s14 + $0x80] sm:$0xff] }
  0x39   : > { %640 = vmatpush.msra.mxu2 %v852_v50  ;;  %464 = vmatpush.msra.mxu1 %v867_v53  ;;  %v619_v63 = vld [vmem:[%s1091_s11] sm:$0xff] }
  0x3a   : > { %420 = vmatpush.msra.mxu0 %v363_v19  ;;  %887 = vmatpush.msra.mxu3 %v363_v19 }
  0x3b   : > { %641 = vmatpush.msra.mxu2 %v851_v54  ;;  %465 = vmatpush.msra.mxu1 %v866_v56 }
  0x3c   : > { %421 = vmatpush.msra.mxu0 %v362_v20  ;;  %888 = vmatpush.msra.mxu3 %v362_v20 }
  0x3d   : > { %642 = vmatpush.msra.mxu2 %v850_v57  ;;  %466 = vmatpush.msra.mxu1 %v865_v58 }
  0x3e   : > { %422 = vmatpush.msra.mxu0 %v361_v21  ;;  %889 = vmatpush.msra.mxu3 %v361_v21 }
  0x3f   : > { %643 = vmatpush.msra.mxu2 %v849_v59  ;;  %467 = vmatpush.msra.mxu1 %v864_v60 }
  0x40   : > { %423 = vmatpush.msra.mxu0 %v360_v26  ;;  %890 = vmatpush.msra.mxu3 %v360_v26 }
  0x41   : > { %644 = vmatpush.msra.mxu2 %v848_v61  ;;  %468 = vmatpush.msra.mxu1 %v863_v0 }
  0x42   : > { %424 = vmatpush.msra.mxu0 %v359_v27  ;;  %891 = vmatpush.msra.mxu3 %v359_v27 }
  0x43   : > { %425 = vmatmul.f32.vlgmr.msra.gmra.mxu0 %v351_v28  ;;  %443 = vmatmul.f32.vlgmr.msra.gmra.mxu3 %v357_v29 }
  0x44   : > { %892 = vmatpush.msrb.mxu3 %v873_v36  ;;  %645 = vmatpush.msra.mxu2 %v847_v1 }
  0x45   : > { %469 = vmatpush.msra.mxu1 %v862_v3 }
  0x46   : > { %893 = vmatpush.msrb.mxu3 %v872_v38  ;;  %646 = vmatpush.msra.mxu2 %v846_v4 }
  0x47   : > { %470 = vmatpush.msra.mxu1 %v861_v5 }
  0x48   : > { %894 = vmatpush.msrb.mxu3 %v871_v42  ;;  %647 = vmatpush.msra.mxu2 %v845_v6 }
  0x49   : > { %471 = vmatpush.msra.mxu1 %v860_v7 }
  0x4a   : > { %895 = vmatpush.msrb.mxu3 %v870_v45  ;;  %648 = vmatpush.msra.mxu2 %v844_v8 }
  0x4b   : > { %428 = vmatmul.f32.gmra.mxu0 %v352_v34  ;;  %446 = vmatmul.f32.gmra.mxu3 %v358_v35 }
  0x4c   : > { %896 = vmatpush.msrb.mxu3 %v869_v47  ;;  %472 = vmatpush.msra.mxu1 %v859_v12 }
  0x4d   : > { %649 = vmatpush.msra.mxu2 %v843_v13 }
  0x4e   : > { %897 = vmatpush.msrb.mxu3 %v868_v49  ;;  %473 = vmatpush.msra.mxu1 %v858_v14 }
  0x4f   : > { %650 = vmatpush.msra.mxu2 %v842_v15 }
  0x50   : > { %898 = vmatpush.msrb.mxu3 %v867_v53 }
  0x52   : > { %899 = vmatpush.msrb.mxu3 %v866_v56 }
  0x53   : > { %431 = vmatmul.f32.gmra.mxu0 %v353_v44 }
  0x54   : > { %900 = vmatpush.msrb.mxu3 %v865_v58 }
  0x56   : > { %901 = vmatpush.msrb.mxu3 %v864_v60 }
  0x58   : > { %902 = vmatpush.msrb.mxu3 %v863_v0 }
  0x5a   : > { %903 = vmatpush.msrb.mxu3 %v862_v3 }
  0x5b   : > { %434 = vmatmul.f32.gmra.mxu0 %v354_v55 }
  0x5c   : > { %904 = vmatpush.msrb.mxu3 %v861_v5 }
  0x5e   : > { %905 = vmatpush.msrb.mxu3 %v860_v7 }
  0x60   : > { %906 = vmatpush.msrb.mxu3 %v859_v12 }
  0x62   : > { %907 = vmatpush.msrb.mxu3 %v858_v14 }
  0x63   : > { %437 = vmatmul.f32.gmra.mxu0 %v355_v2 }
  0x6b   : > { %440 = vmatmul.f32.gmra.mxu0 %v356_v11 }
  0xc0   : > { %v426_v16 = vpop.f32.mrf.mxu0 }
  0xc1   : > { %v450_v17 = vmax.f32 %v426_v16, 0.0 }
  0xc3   : > { %474 = vmatmul.f32.vlgmr.msra.gmra.mxu1 %v450_v17  ;;  %651 = vmatmul.f32.vlgmr.msra.gmra.mxu2 %v450_v17 }
  0xc6   : > { %v444_v18 = vpop.f32.mrf.mxu3 }
  0xc7   : > { %v456_v31 = vmax.f32 %v444_v18, 0.0 }
  0xc8   : > { %v429_v19 = vpop.f32.mrf.mxu0 }
  0xc9   : > { %v451_v20 = vmax.f32 %v429_v19, 0.0  ;;  %v620_v19 = vld [vmem:[%s1091_s11 + $0x8] sm:$0xff] }
  0xcb   : > { %477 = vmatmul.f32.gmra.mxu1 %v451_v20  ;;  %654 = vmatmul.f32.gmra.mxu2 %v451_v20 }
  0xce   : > { %v447_v21 = vpop.f32.mrf.mxu3 }
  0xcf   : > { %v457_v22 = vmax.f32 %v447_v21, 0.0 }
  0xd0   : > { %v432_v23 = vpop.f32.mrf.mxu0 }
  0xd1   : > { %v452_v24 = vmax.f32 %v432_v23, 0.0  ;;  %495 = vmatmul.f32.vlgmr.msrb.gmra.mxu3 %v457_v22 }
  0xd3   : > { %480 = vmatmul.f32.gmra.mxu1 %v452_v24  ;;  %657 = vmatmul.f32.gmra.mxu2 %v452_v24 }
  0xd8   : > { %v435_v25 = vpop.f32.mrf.mxu0 }
  0xd9   : > { %v453_v26 = vmax.f32 %v435_v25, 0.0 }
  0xdb   : > { %483 = vmatmul.f32.gmra.mxu1 %v453_v26  ;;  %660 = vmatmul.f32.gmra.mxu2 %v453_v26 }
  0xe0   : > { %v438_v27 = vpop.f32.mrf.mxu0 }
  0xe1   : > { %v454_v28 = vmax.f32 %v438_v27, 0.0 }
  0xe3   : > { %486 = vmatmul.f32.gmra.mxu1 %v454_v28  ;;  %663 = vmatmul.f32.gmra.mxu2 %v454_v28 }
  0xe8   : > { %v441_v29 = vpop.f32.mrf.mxu0 }
  0xe9   : > { %v455_v30 = vmax.f32 %v441_v29, 0.0 }
  0xeb   : > { %489 = vmatmul.f32.gmra.mxu1 %v455_v30  ;;  %666 = vmatmul.f32.gmra.mxu2 %v455_v30 }
  0xf3   : > { %492 = vmatmul.f32.gmra.mxu1 %v456_v31  ;;  %669 = vmatmul.f32.gmra.mxu2 %v456_v31 }
  0xfb   : > { %672 = vmatmul.f32.gmra.mxu2 %v457_v22 }
 0x140   : > { %v475_v32 = vpop.f32.mrf.mxu1 }
 0x141   : > { %v499_v33 = vmul.f32 1.442695, %v475_v32 }
 0x143   : > { %949 = vpow2.f32 %v499_v33 }
 0x146   : > { %v652_v34 = vpop.f32.mrf.mxu2 }
 0x148   : > { %v478_v35 = vpop.f32.mrf.mxu1 }
 0x149   : > { %v950_v36 = vpop.eup %949  ;;  %v501_v37 = vmul.f32 1.442695, %v478_v35 }
 0x14a   : > { %v515_v38 = vadd.f32 0.001, %v950_v36 }
 0x14b   : > { %951 = vpow2.f32 %v501_v37 }
 0x14c   : > { %953 = vrsqrt.f32 %v515_v38  ;;  %vm530_vm0 = vcmp.eq.f32.partialorder %v515_v38, inf  ;;  %v533_v62 = vand.u32 2147483648, %v515_v38  ;;  %vm532_vm1 = vcmp.eq.f32.partialorder %v515_v38, 0.0 }
 0x14e   : > { %v1160_v39 = vpop.f32.mrf.mxu2 }
 0x150   : > { %v481_v40 = vpop.f32.mrf.mxu1 }
 0x151   : > { %v952_v41 = vpop.eup %951  ;;  %v503_v42 = vmul.f32 1.442695, %v481_v40 }
 0x152   : > { %v954_v43 = vpop.eup %953  ;;  %v516_v44 = vadd.f32 0.001, %v952_v41  ;;  %v621_v41 = vld [vmem:[%s1091_s11 + $0x10] sm:$0xff] }
 0x153   : > { %v524_v45 = vmul.f32 %v954_v43, %v515_v38  ;;  %955 = vpow2.f32 %v503_v42 }
 0x154   : > { %957 = vrsqrt.f32 %v516_v44  ;;  %v496_v46 = vpop.f32.mrf.mxu3  ;;  %vm542_vm2 = vcmp.eq.f32.partialorder %v516_v44, inf  ;;  %v545_v18 = vand.u32 2147483648, %v516_v44  ;;  %vm544_vm3 = vcmp.eq.f32.partialorder %v516_v44, 0.0 }
 0x155   : > { %v525_v47 = vmul.f32 %v954_v43, %v524_v45  ;;  %v513_v48 = vmul.f32 1.442695, %v496_v46 }
 0x156   : > { %v1162_v49 = vpop.f32.mrf.mxu2 }
 0x157   : > { %v526_v50 = vmul.f32 0.5, %v525_v47  ;;  %959 = vpow2.f32 %v513_v48 }
 0x158   : > { %v484_v51 = vpop.f32.mrf.mxu1 }
 0x159   : > { %v956_v52 = vpop.eup %955  ;;  %v527_v53 = vsub.f32 1.5, %v526_v50  ;;  %v505_v54 = vmul.f32 1.442695, %v484_v51 }
 0x15a   : > { %v958_v55 = vpop.eup %957  ;;  %v1164_v56 = vadd.f32 0.001, %v956_v52 }
 0x15b   : > { %v528_v57 = vmul.f32 %v954_v43, %v527_v53  ;;  %v536_v58 = vmul.f32 %v958_v55, %v516_v44  ;;  %961 = vpow2.f32 %v505_v54 }
 0x15c   : > { %963 = vrsqrt.f32 %v1164_v56  ;;  %vm554_vm4 = vcmp.eq.f32.partialorder %v1164_v56, inf  ;;  %v557_v40 = vand.u32 2147483648, %v1164_v56  ;;  %vm556_vm5 = vcmp.eq.f32.partialorder %v1164_v56, 0.0 }
 0x15d   : > { %v960_v59 = vpop.eup %959  ;;  %v529_v60 = vmul.f32 %v528_v57, %v515_v38  ;;  %v537_v61 = vmul.f32 %v958_v55, %v536_v58 }
 0x15e   : > { %v1168_v0 = vadd.f32 0.001, %v960_v59  ;;  %v1170_v1 = vpop.f32.mrf.mxu2 }
 0x15f   : > { %v531_v2 = vsel %vm530_vm0, %v515_v38, %v529_v60  ;;  %v538_v3 = vmul.f32 0.5, %v537_v61 }
 0x160   : > { %v534_v4 = vsel %vm532_vm1, %v533_v62, %v531_v2  ;;  %965 = vrsqrt.f32 %v1168_v0  ;;  %v487_v5 = vpop.f32.mrf.mxu1  ;;  %vm614_vm6 = vcmp.eq.f32.partialorder %v1168_v0, inf  ;;  %vm616_vm7 = vcmp.eq.f32.partialorder %v1168_v0, 0.0  ;;  %v622_v62 = vld [vmem:[%s1091_s11 + $0x18] sm:$0xff] }
 0x161   : > { %v962_v6 = vpop.eup %961  ;;  %v627_v7 = vmul.f32 %v619_v63, %v534_v4  ;;  %v539_v8 = vsub.f32 1.5, %v538_v3  ;;  %v507_v9 = vmul.f32 1.442695, %v487_v5 }
 0x162   : > { %v964_v10 = vpop.eup %963  ;;  %v1173_v11 = vadd.f32 0.001, %v962_v6 }
 0x163   : > { %v653_v12 = vadd.f32 %v652_v34, %v627_v7  ;;  %v540_v13 = vmul.f32 %v958_v55, %v539_v8  ;;  %v548_v14 = vmul.f32 %v964_v10, %v1164_v56  ;;  %967 = vpow2.f32 %v507_v9  ;;  %v626_v7 = vld [vmem:[%s1091_s11 + $0x38] sm:$0xff] }
 0x164   : > { %969 = vrsqrt.f32 %v1173_v11  ;;  %vm566_vm8 = vcmp.eq.f32.partialorder %v1173_v11, inf  ;;  %vm568_vm9 = vcmp.eq.f32.partialorder %v1173_v11, 0.0 }
 0x165   : > { %676 = vst [vmem:[%s1101_s23] sm:$0xff] %v653_v12  ;;  %v541_v15 = vmul.f32 %v540_v13, %v516_v44  ;;  %v549_v16 = vmul.f32 %v964_v10, %v548_v14 }
 0x166   : > { %v966_v17 = vpop.eup %965  ;;  %684 = vst [vmem:[#allocation2 + $0x30] sm:$0xff] %v653_v12  ;;  %v1179_v20 = vpop.f32.mrf.mxu2 }
 0x167   : > { %v543_v21 = vsel %vm542_vm2, %v516_v44, %v541_v15  ;;  %v550_v22 = vmul.f32 0.5, %v549_v16  ;;  %v608_v23 = vmul.f32 %v966_v17, %v1168_v0 }
 0x168   : > { %v546_v24 = vsel %vm544_vm3, %v545_v18, %v543_v21  ;;  %v490_v25 = vpop.f32.mrf.mxu1 }
 0x169   : > { %v968_v26 = vpop.eup %967  ;;  %v628_v27 = vmul.f32 %v620_v19, %v546_v24  ;;  %v551_v28 = vsub.f32 1.5, %v550_v22  ;;  %v509_v29 = vmul.f32 1.442695, %v490_v25  ;;  %v609_v30 = vmul.f32 %v966_v17, %v608_v23  ;;  %v623_v19 = vld [vmem:[%s1091_s11 + $0x20] sm:$0xff] }
 0x16a   : > { %v970_v31 = vpop.eup %969  ;;  %v1182_v32 = vadd.f32 0.001, %v968_v26 }
 0x16b   : > { %v656_v33 = vadd.f32 %v1160_v39, %v628_v27  ;;  %v552_v34 = vmul.f32 %v964_v10, %v551_v28  ;;  %v560_v35 = vmul.f32 %v970_v31, %v1173_v11  ;;  %971 = vpow2.f32 %v509_v29 }
 0x16c   : > { %973 = vrsqrt.f32 %v1182_v32  ;;  %v610_v38 = vmul.f32 0.5, %v609_v30  ;;  %vm578_vm10 = vcmp.eq.f32.partialorder %v1182_v32, inf  ;;  %v581_v18 = vand.u32 2147483648, %v1182_v32 }
 0x16d   : > { %677 = vst [vmem:[%s1101_s23 + $0x8] sm:$0xff] %v656_v33  ;;  %v553_v36 = vmul.f32 %v552_v34, %v1164_v56  ;;  %v561_v37 = vmul.f32 %v970_v31, %v560_v35  ;;  %vm580_vm11 = vcmp.eq.f32.partialorder %v1182_v32, 0.0  ;;  %v624_v34 = vld [vmem:[%s1091_s11 + $0x28] sm:$0xff] }
 0x16e   : > { %685 = vst [vmem:[#allocation2] sm:$0xff] %v656_v33  ;;  %v1192_v42 = vpop.f32.mrf.mxu2  ;;  %v611_v44 = vsub.f32 1.5, %v610_v38 }
 0x16f   : > { %v555_v39 = vsel %vm554_vm4, %v1164_v56, %v553_v36  ;;  %v562_v43 = vmul.f32 0.5, %v561_v37  ;;  %v617_v56 = vand.u32 2147483648, %v1168_v0 }
 0x170   : > { %v558_v45 = vsel %vm556_vm5, %v557_v40, %v555_v39  ;;  %v493_v46 = vpop.f32.mrf.mxu1  ;;  %v612_v52 = vmul.f32 %v966_v17, %v611_v44  ;;  %v625_v44 = vld [vmem:[%s1091_s11 + $0x30] sm:$0xff] }
 0x171   : > { %v972_v47 = vpop.eup %971  ;;  %v629_v48 = vmul.f32 %v621_v41, %v558_v45  ;;  %v563_v50 = vsub.f32 1.5, %v562_v43  ;;  %v511_v51 = vmul.f32 1.442695, %v493_v46 }
 0x172   : > { %v974_v53 = vpop.eup %973  ;;  %v1196_v54 = vadd.f32 0.001, %v972_v47  ;;  %v613_v61 = vmul.f32 %v612_v52, %v1168_v0 }
 0x173   : > { %v659_v55 = vadd.f32 %v1162_v49, %v629_v48  ;;  %v564_v57 = vmul.f32 %v970_v31, %v563_v50  ;;  %v572_v58 = vmul.f32 %v974_v53, %v1182_v32  ;;  %975 = vpow2.f32 %v511_v51 }
 0x174   : > { %977 = vrsqrt.f32 %v1196_v54  ;;  %v569_v49 = vand.u32 2147483648, %v1173_v11  ;;  %v615_v4 = vsel %vm614_vm6, %v1168_v0, %v613_v61  ;;  %vm590_vm12 = vcmp.eq.f32.partialorder %v1196_v54, inf }
 0x175   : > { %678 = vst [vmem:[%s1101_s23 + $0x10] sm:$0xff] %v659_v55  ;;  %v565_v59 = vmul.f32 %v564_v57, %v1173_v11  ;;  %v573_v60 = vmul.f32 %v974_v53, %v572_v58  ;;  %v618_v6 = vsel %vm616_vm7, %v617_v56, %v615_v4  ;;  %vm592_vm13 = vcmp.eq.f32.partialorder %v1196_v54, 0.0 }
 0x176   : > { %686 = vst [vmem:[#allocation2 + $0x18] sm:$0xff] %v659_v55  ;;  %v1210_v63 = vpop.f32.mrf.mxu2  ;;  %v634_v17 = vmul.f32 %v626_v7, %v618_v6 }
 0x177   : > { %v567_v2 = vsel %vm566_vm8, %v1173_v11, %v565_v59  ;;  %v574_v3 = vmul.f32 0.5, %v573_v60 }
 0x178   : > { %v570_v5 = vsel %vm568_vm9, %v569_v49, %v567_v2 }
 0x179   : > { %v976_v8 = vpop.eup %975  ;;  %v630_v9 = vmul.f32 %v622_v62, %v570_v5  ;;  %v575_v10 = vsub.f32 1.5, %v574_v3 }
 0x17a   : > { %v978_v12 = vpop.eup %977  ;;  %v521_v13 = vadd.f32 0.001, %v976_v8 }
 0x17b   : > { %v662_v14 = vadd.f32 %v1170_v1, %v630_v9  ;;  %v576_v15 = vmul.f32 %v974_v53, %v575_v10  ;;  %v584_v16 = vmul.f32 %v978_v12, %v1196_v54 }
 0x17c   : > { %979 = vrsqrt.f32 %v521_v13  ;;  %vm602_vm14 = vcmp.eq.f32.partialorder %v521_v13, inf  ;;  %v605_v43 = vand.u32 2147483648, %v521_v13  ;;  %vm604_vm15 = vcmp.eq.f32.partialorder %v521_v13, 0.0 }
 0x17d   : > { %679 = vst [vmem:[%s1101_s23 + $0x18] sm:$0xff] %v662_v14  ;;  %v577_v0 = vmul.f32 %v576_v15, %v1182_v32  ;;  %v585_v11 = vmul.f32 %v978_v12, %v584_v16 }
 0x17e   : > { %687 = vst [vmem:[#allocation2 + $0x10] sm:$0xff] %v662_v14  ;;  %v673_v21 = vpop.f32.mrf.mxu2 }
 0x17f   : > { %v579_v1 = vsel %vm578_vm10, %v1182_v32, %v577_v0  ;;  %v586_v22 = vmul.f32 0.5, %v585_v11  ;;  %v674_v23 = vadd.f32 %v673_v21, %v634_v17  ;;  %v593_v32 = vand.u32 2147483648, %v1196_v54 }
 0x180   : > { %v582_v24 = vsel %vm580_vm11, %v581_v18, %v579_v1 }
 0x181   : > { %v631_v25 = vmul.f32 %v623_v19, %v582_v24  ;;  %v587_v26 = vsub.f32 1.5, %v586_v22  ;;  %683 = vst [vmem:[%s1101_s23 + $0x38] sm:$0xff] %v674_v23 }
 0x182   : > { %v980_v27 = vpop.eup %979  ;;  %691 = vst [vmem:[#allocation2 + $0x38] sm:$0xff] %v674_v23 }
 0x183   : > { %v665_v28 = vadd.f32 %v1179_v20, %v631_v25  ;;  %v588_v29 = vmul.f32 %v978_v12, %v587_v26  ;;  %v596_v30 = vmul.f32 %v980_v27, %v521_v13 }
 0x185   : > { %680 = vst [vmem:[%s1101_s23 + $0x20] sm:$0xff] %v665_v28  ;;  %v589_v31 = vmul.f32 %v588_v29, %v1196_v54  ;;  %v597_v33 = vmul.f32 %v980_v27, %v596_v30 }
 0x186   : > { %688 = vst [vmem:[#allocation2 + $0x8] sm:$0xff] %v665_v28 }
 0x187   : > { %v591_v35 = vsel %vm590_vm12, %v1196_v54, %v589_v31  ;;  %v598_v36 = vmul.f32 0.5, %v597_v33 }
 0x188   : > { %v594_v20 = vsel %vm592_vm13, %v593_v32, %v591_v35 }
 0x189   : > { %v632_v37 = vmul.f32 %v624_v34, %v594_v20  ;;  %v599_v38 = vsub.f32 1.5, %v598_v36 }
 0x18b   : > { %v668_v40 = vadd.f32 %v1192_v42, %v632_v37  ;;  %v600_v41 = vmul.f32 %v980_v27, %v599_v38 }
 0x18d   : > { %681 = vst [vmem:[%s1101_s23 + $0x28] sm:$0xff] %v668_v40  ;;  %v601_v39 = vmul.f32 %v600_v41, %v521_v13 }
 0x18e   : > { %689 = vst [vmem:[#allocation2 + $0x20] sm:$0xff] %v668_v40 }
 0x18f   : > { %v603_v45 = vsel %vm602_vm14, %v521_v13, %v601_v39 }
 0x190   : > { %v606_v46 = vsel %vm604_vm15, %v605_v43, %v603_v45 }
 0x191   : > { %v633_v47 = vmul.f32 %v625_v44, %v606_v46 }
 0x193   : > { %v671_v48 = vadd.f32 %v1210_v63, %v633_v47 }
 0x195   : > { %682 = vst [vmem:[%s1101_s23 + $0x30] sm:$0xff] %v671_v48 }
 0x196   : > { %690 = vst [vmem:[#allocation2 + $0x28] sm:$0xff] %v671_v48 }
 0x197 PF: > { %s14_s19 = sadd.s32 1, %s1019_s19   ;;  %s1259_s15 = smov %s1011_s17 }
 0x198   : > { %p11_p8 = scmp.ge.s32.totalorder %s14_s19, 10   ;;  %s1260_s16 = smov %s1015_s18 }
 0x199   : > { %s1261_s17 = smov %s1264_s20  ;;  %s1262_s18 = smov %s1268_s21 }
 0x19a   :  { %13 = sbr.rel (!%p11_p8) target bundleno = 3 (0x3), region = 81 }

</bundles_post_ra>
